<compile_context>
chip_gen: v5e
topology: v5e:2x2
jax: 0.10.0
libtpu: 0.0.40
codegen_flags: <defaults>
</compile_context>

<pallas_src>
import math

import jax
import jax.numpy as jnp
from jax import lax
from jax.experimental import pallas as pl
from jax.experimental.pallas import tpu as pltpu

_LANES = 128
_ACC_SUB = 8  # f32 sublanes per vreg -> accumulator row count


def _cdiv(a: int, b: int) -> int:
    return -(-a // b)


def _round_up(a: int, m: int) -> int:
    return _cdiv(a, m) * m


def _sublane_mult(dtype) -> int:
    # f32 -> 8, bf16 -> 16, int8/fp8 -> 32 (native sublane packing).
    return max(8, 32 // jnp.dtype(dtype).itemsize)


def _default_n_chunks() -> int:
    """1 chunk on single-TensorCore parts (v5e/v6e); one per core on v7x."""
    try:
        info = pltpu.get_tpu_info()
        for attr in ("num_cores", "core_count", "tensorcore_count", "num_tensorcores"):
            n = getattr(info, attr, None)
            if n:
                return max(1, min(int(n), 2))
    except Exception:
        pass
    return 1


def _vmem_capacity_bytes(default: int = 128 * (1 << 20)) -> int:
    try:
        return int(pltpu.get_tpu_info().vmem_capacity_bytes)
    except Exception:
        return default


# ----------------------------------------------------------------------------
# Pallas kernel: per-chunk vreg-sized partial sums of (yhat-y)^2, y, y^2.
# Output block (1, 3, acc_rows, 128) is resident across the reduction axis.
# ----------------------------------------------------------------------------
def _make_nrmse_kernel(tiles_per_chunk: int, br: int, acc_rows: int,
                       valid_rows: int, need_mask: bool):
    def kernel(yhat_ref, y_ref, acc_ref):
        i = pl.program_id(1)  # reduction ("arbitrary") axis

        @pl.when(i == 0)
        def _init():
            acc_ref[...] = jnp.zeros_like(acc_ref)

        def fold(x):
            # Fold a (br, 128) tile down to one (acc_rows, 128) vreg-shaped slab:
            # pure vreg-wise VALU adds, no cross-lane work, tiny RMW on the acc.
            return jnp.sum(x.reshape(-1, acc_rows, _LANES), axis=0)

        def accumulate(yh, yt):
            d = yh - yt
            acc_ref[0, 0] += fold(d * d)
            acc_ref[0, 1] += fold(yt)
            acc_ref[0, 2] += fold(yt * yt)

        yh = yhat_ref[...].astype(jnp.float32)
        yt = y_ref[...].astype(jnp.float32)

        if not need_mask:
            accumulate(yh, yt)
        else:
            t = pl.program_id(0) * tiles_per_chunk + i  # linear tile index
            full = valid_rows // br  # tiles strictly before the ragged boundary

            @pl.when(t < full)
            def _full_tile():
                accumulate(yh, yt)

            @pl.when(t >= full)
            def _edge_tile():
                # Ragged boundary tile (rows beyond the array are unspecified)
                # or a duplicated out-of-range tile (clamped in the index_map):
                # mask rows past the valid extent so they contribute zero.
                row = lax.broadcasted_iota(jnp.int32, (br, _LANES), 0)
                valid = row < (valid_rows - t * br)
                accumulate(jnp.where(valid, yh, 0.0), jnp.where(valid, yt, 0.0))

    return kernel


def nrmse_partial_sums(yhat: jax.Array, y: jax.Array, *,
                       block_rows: int = 8192, n_chunks=None):
    """Fused partial reductions: returns (sum((yhat-y)^2), sum(y), sum(y^2))."""
    assert yhat.shape == y.shape, (yhat.shape, y.shape)

    total = math.prod(y.shape)
    if n_chunks is None:
        n_chunks = _default_n_chunks()
    n_chunks = max(1, int(n_chunks))

    itemsize = jnp.dtype(yhat.dtype).itemsize + jnp.dtype(y.dtype).itemsize
    mult = max(_sublane_mult(yhat.dtype), _sublane_mult(y.dtype))

    # Lane-dense [rows, 128] view. Only the sub-128 ragged tail needs padding;
    # the multiple-of-128 case is a free (bitcast) reshape — no HBM copy.
    flat_yhat = yhat.reshape(-1)
    flat_y = y.reshape(-1)
    rows = max(1, _cdiv(total, _LANES))
    pad = rows * _LANES - total
    if pad:
        # TODO(synk): this <128-element tail pad still copies both inputs in XLA;
        # a manual-DMA (memory_space=pl.ANY) path would avoid even that.
        flat_yhat = jnp.pad(flat_yhat, (0, pad))
        flat_y = jnp.pad(flat_y, (0, pad))
    yhat2 = flat_yhat.reshape(rows, _LANES)
    y2 = flat_y.reshape(rows, _LANES)

    # Tile-size selection: large streaming tiles; only the two double-buffered
    # inputs count (accumulators are vreg-sized now).
    per_row_bytes = _LANES * itemsize * 2  # 2 inputs x 2 pipeline buffers
    budget = min(32 * (1 << 20), _vmem_capacity_bytes() // 2)
    br_cap = max(mult, (budget // per_row_bytes) // mult * mult)

    if rows <= mult:
        br = rows
        acc_rows = rows
        n_chunks = 1
        tiles_per_chunk = 1
        n_tiles = 1
    else:
        br = _round_up(max(int(block_rows), mult), mult)
        br = min(br, (rows // mult) * mult, br_cap)
        acc_rows = _ACC_SUB
        n_tiles = _cdiv(rows, br)
        n_chunks = min(n_chunks, n_tiles)
        tiles_per_chunk = _cdiv(n_tiles, n_chunks)

    grid_tiles = n_chunks * tiles_per_chunk
    need_mask = grid_tiles * br != rows  # ragged last tile and/or duplicated tiles
    last_tile = n_tiles - 1

    # Clamp out-of-range tile indices onto the last real tile; their (masked)
    # contribution is zero, and the DMA stays in bounds.
    in_spec = pl.BlockSpec(
        (br, _LANES),
        lambda c, i: (jnp.minimum(c * tiles_per_chunk + i, last_tile), 0))
    out_spec = pl.BlockSpec((1, 3, acc_rows, _LANES), lambda c, i: (c, 0, 0, 0))
    out_shape = jax.ShapeDtypeStruct((n_chunks, 3, acc_rows, _LANES), jnp.float32)

    out_bytes = n_chunks * 3 * acc_rows * _LANES * 4
    vmem_needed = br * per_row_bytes + 2 * 3 * acc_rows * _LANES * 4
    vmem_limit = int(min(48 * (1 << 20), max(16 * (1 << 20), 2 * vmem_needed)))

    cost = pl.CostEstimate(
        flops=6 * total,
        transcendentals=0,
        bytes_accessed=total * itemsize + out_bytes,
    )

    # TODO(synk): on v7x, verify via xprof that the leading "parallel" axis
    # actually shards the chunks across both TensorCores (else CORE_PARALLEL).
    parts = pl.pallas_call(
        _make_nrmse_kernel(tiles_per_chunk, br, acc_rows, rows, need_mask),
        out_shape=out_shape,
        grid=(n_chunks, tiles_per_chunk),
        in_specs=[in_spec, in_spec],
        out_specs=out_spec,
        compiler_params=pltpu.CompilerParams(
            dimension_semantics=("parallel", "arbitrary"),
            vmem_limit_bytes=vmem_limit,
        ),
        cost_estimate=cost,
    )(yhat2, y2)

    # One tiny XLA reduction over the stacked lane-dense partials.
    sums = jnp.sum(parts, axis=(0, 2, 3))
    return sums[0], sums[1], sums[2]


def nrmse_loss(y: jax.Array, yhat: jax.Array, *,
               block_rows: int = 8192, n_chunks=None,
               min_pallas_elements: int = 1 << 20) -> jax.Array:
    """sqrt( sum((yhat - y)^2) / (y.shape[0] * var(y)) ), torch.var => unbiased."""
    total = math.prod(y.shape)
    n = max(total, 1)

    if total < int(min_pallas_elements):
        # Small tensors: kernel launch / tail handling is pure fixed overhead;
        # XLA fuses these reductions fine at this size.
        y32 = y.astype(jnp.float32)
        yh32 = yhat.astype(jnp.float32)
        sse = jnp.sum((yh32 - y32) ** 2)
        var = jnp.var(y32, ddof=1)
        return jnp.sqrt(sse / (y.shape[0] * var))

    sse, sy, syy = nrmse_partial_sums(yhat, y, block_rows=block_rows,
                                      n_chunks=n_chunks)
    # Unbiased variance from the fused sums (matches torch.var default, ddof=1;
    # n == 1 yields NaN exactly like torch).
    # TODO(synk): the single-pass (syy - sy^2/n)/(n-1) form can cancel badly when
    # |mean(y)| >> std(y); a shifted / two-pass combine would be more robust.
    var = (syy - (sy * sy) / n) / (n - 1)
    return jnp.sqrt(sse / (y.shape[0] * var))


# ----------------------------------------------------------------------------
# Module ports
# ----------------------------------------------------------------------------
class LossFunc:
    """Abstract base: forward() has no tensor compute, returns an empty list."""

    def __init__(self):
        pass

    def forward(self, yhat, y):
        loss = []
        return loss

    def __call__(self, *args, **kwargs):
        return self.forward(*args, **kwargs)


class NRMSELoss(LossFunc):
    """NRMSE loss; heavy reductions run in the fused Pallas kernel."""

    def __init__(self, *, block_rows: int = 8192, n_chunks=None,
                 min_pallas_elements: int = 1 << 20):
        super().__init__()
        self._block_rows = block_rows
        self._n_chunks = n_chunks
        self._min_pallas_elements = min_pallas_elements

    def forward(self, y, yhat):
        return nrmse_loss(y, yhat,
                          block_rows=self._block_rows,
                          n_chunks=self._n_chunks,
                          min_pallas_elements=self._min_pallas_elements)


if __name__ == "__main__":
    key = jax.random.PRNGKey(0)
    k1, k2, k3, k4 = jax.random.split(key, 4)

    def torch_ref(yt, yh):
        return jnp.sqrt(jnp.sum((yh - yt) ** 2) / (yt.shape[0] * jnp.var(yt, ddof=1)))

    # Small NCHW shapes consistent with a loss over conv feature maps.
    y = jax.random.normal(k1, (2, 4, 16, 16), dtype=jnp.float32)
    yhat = jax.random.normal(k2, (2, 4, 16, 16), dtype=jnp.float32)

    # Abstract base forward must return an empty list.
    base = LossFunc()
    assert base(yhat, y) == []

    # Force the Pallas path even at these small self-test sizes.
    mod = NRMSELoss(min_allas_elements=0) if False else NRMSELoss(min_pallas_elements=0)
    loss = jax.block_until_ready(mod(y, yhat))
    ref = torch_ref(y, yhat)
    assert jnp.allclose(loss, ref, rtol=1e-5, atol=1e-6), (loss, ref)

    # Non-multiple-of-128 shape exercises the in-kernel tail-masking path.
    y2 = jax.random.normal(k3, (3, 5, 7, 11), dtype=jnp.float32)
    yhat2 = jax.random.normal(k4, (3, 5, 7, 11), dtype=jnp.float32)
    loss2 = jax.block_until_ready(mod(y2, yhat2))
    ref2 = torch_ref(y2, yhat2)
    assert jnp.allclose(loss2, ref2, rtol=1e-5, atol=1e-6), (loss2, ref2)

    # Default module uses the small-input XLA fallback at these sizes.
    mod_default = NRMSELoss()
    loss3 = jax.block_until_ready(mod_default(y, yhat))
    assert jnp.allclose(loss3, ref, rtol=1e-5, atol=1e-6), (loss3, ref)

    print("KERNEL_OK")
</pallas_src>

<mosaic_0001>
module attributes {stable_mosaic.version = 11 : i64} {
  func.func @kernel(%arg0: i32, %arg1: i32, %arg2: memref<16x128xf32, #tpu.memory_space<vmem>>, %arg3: memref<16x128xf32, #tpu.memory_space<vmem>>, %arg4: memref<1x3x8x128xf32, #tpu.memory_space<vmem>>) attributes {dimension_semantics = [#tpu.dimension_semantics<parallel>, #tpu.dimension_semantics<arbitrary>], iteration_bounds = array<i64: 1, 1>, scalar_prefetch = 0 : i64, scratch_operands = 0 : i64, tpu.core_type = #tpu.core_type<tc>, window_params = [{transform_indices = @transform_0, window_bounds = array<i64: 16, 128>}, {transform_indices = @transform_1, window_bounds = array<i64: 16, 128>}, {transform_indices = @transform_2, window_bounds = array<i64: 1, 3, 8, 128>}]} {
    %c0_i32 = arith.constant 0 : i32
    %0 = arith.cmpi eq, %arg1, %c0_i32 : i32
    %1 = arith.extui %0 : i1 to i32
    %c0_i32_0 = arith.constant 0 : i32
    %2 = arith.cmpi ne, %1, %c0_i32_0 : i32
    scf.if %2 {
      %cst_28 = arith.constant 0.000000e+00 : f32
      %32 = vector.broadcast %cst_28 : f32 to vector<1x3x8x128xf32>
      %c0_29 = arith.constant 0 : index
      %c0_30 = arith.constant 0 : index
      %c0_31 = arith.constant 0 : index
      %c0_32 = arith.constant 0 : index
      %33 = vector.load %arg4[%c0_29, %c0_30, %c0_31, %c0_32] : memref<1x3x8x128xf32, #tpu.memory_space<vmem>>, vector<1x3x8x128xf32>
      tpu.vector_store %arg4[%c0_29, %c0_30, %c0_31, %c0_32], %32 {strides = array<i32>} : memref<1x3x8x128xf32, #tpu.memory_space<vmem>>, vector<1x3x8x128xf32>,
    } else {
    }
    %c0 = arith.constant 0 : index
    %c0_1 = arith.constant 0 : index
    %3 = vector.load %arg2[%c0, %c0_1] : memref<16x128xf32, #tpu.memory_space<vmem>>, vector<16x128xf32>
    %c0_2 = arith.constant 0 : index
    %c0_3 = arith.constant 0 : index
    %4 = vector.load %arg3[%c0_2, %c0_3] : memref<16x128xf32, #tpu.memory_space<vmem>>, vector<16x128xf32>
    %5 = arith.subf %3, %4 : vector<16x128xf32>
    %c0_4 = arith.constant 0 : index
    %c0_5 = arith.constant 0 : index
    %c0_6 = arith.constant 0 : index
    %c0_7 = arith.constant 0 : index
    %6 = vector.load %arg4[%c0_4, %c0_5, %c0_6, %c0_7] : memref<1x3x8x128xf32, #tpu.memory_space<vmem>>, vector<1x1x8x128xf32>
    %7 = vector.shape_cast %6 : vector<1x1x8x128xf32> to vector<8x128xf32>
    %8 = arith.mulf %5, %5 : vector<16x128xf32>
    %9 = vector.shape_cast %8 : vector<16x128xf32> to vector<2x8x128xf32>
    %cst = arith.constant dense<0.000000e+00> : vector<8x128xf32>
    %10 = vector.multi_reduction <add>, %9, %cst [0] : vector<2x8x128xf32> to vector<8x128xf32>
    %11 = arith.addf %7, %10 : vector<8x128xf32>
    %c0_8 = arith.constant 0 : index
    %c0_9 = arith.constant 0 : index
    %c0_10 = arith.constant 0 : index
    %c0_11 = arith.constant 0 : index
    %12 = vector.load %arg4[%c0_8, %c0_9, %c0_10, %c0_11] : memref<1x3x8x128xf32, #tpu.memory_space<vmem>>, vector<1x1x8x128xf32>
    %13 = vector.shape_cast %12 : vector<1x1x8x128xf32> to vector<8x128xf32>
    %14 = vector.shape_cast %11 : vector<8x128xf32> to vector<1x1x8x128xf32>
    tpu.vector_store %arg4[%c0_8, %c0_9, %c0_10, %c0_11], %14 {strides = array<i32>} : memref<1x3x8x128xf32, #tpu.memory_space<vmem>>, vector<1x1x8x128xf32>,
    %c0_12 = arith.constant 0 : index
    %c1 = arith.constant 1 : index
    %c0_13 = arith.constant 0 : index
    %c0_14 = arith.constant 0 : index
    %15 = vector.load %arg4[%c0_12, %c1, %c0_13, %c0_14] : memref<1x3x8x128xf32, #tpu.memory_space<vmem>>, vector<1x1x8x128xf32>
    %16 = vector.shape_cast %15 : vector<1x1x8x128xf32> to vector<8x128xf32>
    %17 = vector.shape_cast %4 : vector<16x128xf32> to vector<2x8x128xf32>
    %cst_15 = arith.constant dense<0.000000e+00> : vector<8x128xf32>
    %18 = vector.multi_reduction <add>, %17, %cst_15 [0] : vector<2x8x128xf32> to vector<8x128xf32>
    %19 = arith.addf %16, %18 : vector<8x128xf32>
    %c0_16 = arith.constant 0 : index
    %c1_17 = arith.constant 1 : index
    %c0_18 = arith.constant 0 : index
    %c0_19 = arith.constant 0 : index
    %20 = vector.load %arg4[%c0_16, %c1_17, %c0_18, %c0_19] : memref<1x3x8x128xf32, #tpu.memory_space<vmem>>, vector<1x1x8x128xf32>
    %21 = vector.shape_cast %20 : vector<1x1x8x128xf32> to vector<8x128xf32>
    %22 = vector.shape_cast %19 : vector<8x128xf32> to vector<1x1x8x128xf32>
    tpu.vector_store %arg4[%c0_16, %c1_17, %c0_18, %c0_19], %22 {strides = array<i32>} : memref<1x3x8x128xf32, #tpu.memory_space<vmem>>, vector<1x1x8x128xf32>,
    %c0_20 = arith.constant 0 : index
    %c2 = arith.constant 2 : index
    %c0_21 = arith.constant 0 : index
    %c0_22 = arith.constant 0 : index
    %23 = vector.load %arg4[%c0_20, %c2, %c0_21, %c0_22] : memref<1x3x8x128xf32, #tpu.memory_space<vmem>>, vector<1x1x8x128xf32>
    %24 = vector.shape_cast %23 : vector<1x1x8x128xf32> to vector<8x128xf32>
    %25 = arith.mulf %4, %4 : vector<16x128xf32>
    %26 = vector.shape_cast %25 : vector<16x128xf32> to vector<2x8x128xf32>
    %cst_23 = arith.constant dense<0.000000e+00> : vector<8x128xf32>
    %27 = vector.multi_reduction <add>, %26, %cst_23 [0] : vector<2x8x128xf32> to vector<8x128xf32>
    %28 = arith.addf %24, %27 : vector<8x128xf32>
    %c0_24 = arith.constant 0 : index
    %c2_25 = arith.constant 2 : index
    %c0_26 = arith.constant 0 : index
    %c0_27 = arith.constant 0 : index
    %29 = vector.load %arg4[%c0_24, %c2_25, %c0_26, %c0_27] : memref<1x3x8x128xf32, #tpu.memory_space<vmem>>, vector<1x1x8x128xf32>
    %30 = vector.shape_cast %29 : vector<1x1x8x128xf32> to vector<8x128xf32>
    %31 = vector.shape_cast %28 : vector<8x128xf32> to vector<1x1x8x128xf32>
    tpu.vector_store %arg4[%c0_24, %c2_25, %c0_26, %c0_27], %31 {strides = array<i32>} : memref<1x3x8x128xf32, #tpu.memory_space<vmem>>, vector<1x1x8x128xf32>,
    return
  }
  func.func @transform_0(%arg0: i32, %arg1: i32) -> (i32, i32) {
    %c1_i32 = arith.constant 1 : i32
    %0 = arith.muli %arg0, %c1_i32 : i32
    %1 = arith.addi %0, %arg1 : i32
    %c0_i32 = arith.constant 0 : i32
    %2 = arith.minsi %1, %c0_i32 : i32
    %c0_i32_0 = arith.constant 0 : i32
    %c0_i32_1 = arith.constant 0 : i32
    return %2, %c0_i32_0 : i32, i32
  }
  func.func @transform_1(%arg0: i32, %arg1: i32) -> (i32, i32) {
    %c1_i32 = arith.constant 1 : i32
    %0 = arith.muli %arg0, %c1_i32 : i32
    %1 = arith.addi %0, %arg1 : i32
    %c0_i32 = arith.constant 0 : i32
    %2 = arith.minsi %1, %c0_i32 : i32
    %c0_i32_0 = arith.constant 0 : i32
    %c0_i32_1 = arith.constant 0 : i32
    return %2, %c0_i32_0 : i32, i32
  }
  func.func @transform_2(%arg0: i32, %arg1: i32) -> (i32, i32, i32, i32) {
    %c0_i32 = arith.constant 0 : i32
    %c0_i32_0 = arith.constant 0 : i32
    %c0_i32_1 = arith.constant 0 : i32
    %c0_i32_2 = arith.constant 0 : i32
    return %arg0, %c0_i32, %c0_i32_0, %c0_i32_1 : i32, i32, i32, i32
  }
}

</mosaic_0001>

<bundles_post_ra>
// kernel: tpu_custom_call.1
= control target key start
LH: loop header
LB: loop body
LE: loop exit
PB: predicated region body
PF: predicated region fallthrough
CT: control target
= control target key end

     0   :  { %7 = vsyncpa [#allocation3], 0  ;;  %s241_s0 = inlined_call_operand.hbm [shape: f32[16,128], index: 0, kind: input, shape index: {}]   ;;  %s242_s1 = inlined_call_operand.hbm [shape: f32[16,128], index: 1, kind: input, shape index: {}]   ;;  %s243_s2 = inlined_call_operand.hbm [shape: f32[1,3,8,128], index: 2, kind: output, shape index: {}]  }
   0x1   :  { %8 = vsyncpa [#allocation6], 0 }
   0x2   :  { %9 = vsyncpa [#allocation4], 0  ;;  %s20_s11 = sshll.u32 %s241_s0, 4  ;;  %s203_s12 = smov [#allocation2]   ;;  %s21_s11 = int_to_ptr.hbm [resolvable:$true] %s20_s11 }
   0x3   :  { %s22_s13 = sshll.u32 %s203_s12, 4  ;;  %s39_s16 = sshll.u32 %s242_s1, 4  ;;  %s23_s13 = int_to_ptr.vmem [resolvable:$true] %s22_s13  ;;  %s40_s16 = int_to_ptr.hbm [resolvable:$true] %s39_s16 }
   0x4   :  { %s204_s17 = smov 128   ;;  %s205_s18 = smov 8  }
   0x5   :  { %28 = dma.hbm_to_vmem [thread:$0]  %s21_s11, 256, %s23_s13, [#allocation3], %s204_s17, %s204_s17, %s205_s18  }
   0x6   :  { %s206_s19 = smov [#allocation5]  }
   0x7   :  { %s41_s20 = sshll.u32 %s206_s19, 4  ;;  %s42_s20 = int_to_ptr.vmem [resolvable:$true] %s41_s20 }
   0x8   :  { %47 = dma.hbm_to_vmem [thread:$0]  %s40_s16, 256, %s42_s20, [#allocation6], %s204_s17, %s204_s17, %s205_s18  }
   0x9   :  { %197 = dma.done.wait [#allocation3], 256  }
   0xa   :  { %198 = vsyncadd [#allocation3], 4294967040 }
   0xb   :  { %199 = dma.done.wait [#allocation6], 256  }
   0xc   :  { %200 = vsyncadd [#allocation6], 4294967040  ;;  %v71_v0 = vld [vmem:[#allocation2] sm:$0xff]  ;;  %v72_v1 = vld [vmem:[#allocation2 + $0x8] sm:$0xff]  ;;  %s207_s0 = smov [#allocation7]   ;;  %s101_s23 = sshll.u32 %s243_s2, 4  ;;  %s102_s23 = int_to_ptr.hbm [resolvable:$true] %s101_s23 }
   0xd   :  { %v73_v2 = vld [vmem:[#allocation5] sm:$0xff]  ;;  %v74_v3 = vld [vmem:[#allocation5 + $0x8] sm:$0xff]  ;;  %s99_s1 = sshll.u32 %s207_s0, 4  ;;  %s100_s1 = int_to_ptr.vmem [resolvable:$true] %s99_s1 }
   0xe   :  { %v75_v4 = vsub.f32 %v71_v0, %v73_v2  ;;  %v90_v5 = vmul.f32 %v73_v2, %v73_v2  ;;  %v76_v6 = vsub.f32 %v72_v1, %v74_v3  ;;  %v85_v7 = vadd.f32 %v74_v3, %v73_v2 }
   0xf   :  { %v91_v8 = vmul.f32 %v74_v3, %v74_v3 }
  0x10   :  { %v78_v9 = vmul.f32 %v75_v4, %v75_v4  ;;  %v79_v10 = vmul.f32 %v76_v6, %v76_v6  ;;  %87 = vst [vmem:[#allocation7 + $0x8] sm:$0xff] %v85_v7 }
  0x11   :  { %v92_v11 = vadd.f32 %v91_v8, %v90_v5 }
  0x12   :  { %v80_v12 = vadd.f32 %v79_v10, %v78_v9 }
  0x13   :  { %94 = vst [vmem:[#allocation7 + $0x10] sm:$0xff] %v92_v11 }
  0x14   :  { %82 = vst [vmem:[#allocation7] sm:$0xff] %v80_v12 }
  0x15   :  { %107 = dma.vmem_to_hbm [thread:$0]  %s100_s1, 384, %s102_s23, [#allocation4], %s204_s17, %s204_s17, %s205_s18  }
  0x16   :  { %201 = dma.done.wait [#allocation4], 384  }
  0x17   :  { %202 = vsyncadd [#allocation4], 4294966912 }
  0x18   :  { %112 = vsyncpa [#allocation3], 1 }
  0x19   :  { %113 = vsyncpa [#allocation6], 1 }
  0x1a   :  { %114 = vsyncpa [#allocation4], 1 }

</bundles_post_ra>
